<compile_context>
chip_gen: v6e
topology: v6e:2x2x1
jax: 0.10.0
libtpu: 0.0.40
codegen_flags: <defaults>
</compile_context>

<pallas_src>
import jax
import jax.numpy as jnp
from jax.experimental import pallas as pl
from jax.experimental.pallas import tpu as pltpu

KSIZE = 3  # 3x3 convs, stride 1, padding (kSize - 1) // 2 = 1


def _tap_masks(H, W, B):
    """(9, B*H*W) f32 masks: 1 where the shifted source pixel stays inside its image."""
    p = jnp.arange(H * W, dtype=jnp.int32)
    row, col = p // W, p % W
    masks = []
    for kh in range(KSIZE):
        for kw in range(KSIZE):
            dh, dw = kh - 1, kw - 1
            m = ((row + dh >= 0) & (row + dh < H) &
                 (col + dw >= 0) & (col + dw < W))
            masks.append(m)
    base = jnp.stack(masks, axis=0).astype(jnp.float32)     # (9, H*W)
    return jnp.tile(base, (1, B))                           # repeated per packed image


def _conv3x3_fused(plane, w_ref, b_ref, masks, W, HWT):
    """SAME 3x3 conv + bias + ReLU on a flat (Cin, HWT) f32 plane.

    Single MXU dot: (Cout, 9*Cin) bf16 weights x (9*Cin, HWT) bf16 tap stack, f32 acc.
    Zero padding handled by the per-tap border masks; cross-image lane wraps (when
    several images are packed along lanes) are always masked out as well.
    """
    taps = []
    for kh in range(KSIZE):
        for kw in range(KSIZE):
            dh, dw = kh - 1, kw - 1
            s = dh * W + dw                       # flat source offset for this tap
            if s == 0:
                taps.append(plane)                # centre tap: no shift, no mask
            else:
                shifted = pltpu.roll(plane, shift=(-s) % HWT, axis=1)   # XLU rotation
                t = kh * KSIZE + kw
                taps.append(shifted * masks[t:t + 1, :])
    stack = jnp.concatenate(taps, axis=0).astype(jnp.bfloat16)          # (9*Cin, HWT)
    y = jnp.dot(w_ref[...], stack, preferred_element_type=jnp.float32)  # MXU, K=9*Cin
    return jnp.maximum(y + b_ref[...], 0.0)                             # bias + ReLU (f32)


def _make_crb_kernel(W, HWT, has_trans):
    def conv(plane, w_ref, b_ref, masks):
        return _conv3x3_fused(plane, w_ref, b_ref, masks, W, HWT)

    if has_trans:
        def kernel(x_ref, mask_ref, wt_ref, bt_ref, w0_ref, b0_ref,
                   w1_ref, b1_ref, o_ref):
            masks = mask_ref[...]
            x = x_ref[...].astype(jnp.float32)             # (InCh, HWT)
            xa = conv(x, wt_ref, bt_ref, masks)            # trans + ReLU
            xi = conv(xa, w0_ref, b0_ref, masks)           # ConvB[0] + ReLU
            y = conv(xi, w1_ref, b1_ref, masks)            # ConvB[1] + ReLU
            o_ref[...] = (xa + y).astype(o_ref.dtype)      # residual: x + x_inter
    else:
        def kernel(x_ref, mask_ref, w0_ref, b0_ref, w1_ref, b1_ref, o_ref):
            masks = mask_ref[...]
            x = x_ref[...].astype(jnp.float32)
            xi = conv(x, w0_ref, b0_ref, masks)
            y = conv(xi, w1_ref, b1_ref, masks)
            o_ref[...] = (x + y).astype(o_ref.dtype)
    return kernel


def _images_per_step(N, cap=8):
    """Largest B <= cap dividing N that still leaves >=2 grid steps (v7x has 2 TCs)."""
    if N < 2:
        return 1
    best = 1
    for b in range(1, min(N, cap) + 1):
        if N % b == 0 and N // b >= 2:
            best = b
    return best


def crb_forward_pallas(x_nchw, params, in_ch, inter_ch, out_ch):
    """Fused CRB forward: NCHW in -> NCHW out, one pallas_call, B images per grid step."""
    N, C, H, W = x_nchw.shape
    assert C == in_ch
    HW = H * W
    has_trans = in_ch != out_ch

    B = _images_per_step(N)
    G = N // B
    HWT = B * HW                                    # packed lane extent per step

    # Pack B images into the lane axis: (G, C, B*HW).  Pure layout plumbing in the
    # wrapper; the kernel sees dense, unmasked lane slabs.
    x_flat = (x_nchw.reshape(G, B, in_ch, HW)
              .transpose(0, 2, 1, 3)
              .reshape(G, in_ch, HWT))
    masks = _tap_masks(H, W, B)                     # (9, HWT), VMEM-resident

    def w_pack(w_hwio):
        # HWIO -> (Cout, 9*Cin) bf16, rows ordered tap-major then Cin (matches stack).
        kh, kw, cin, cout = w_hwio.shape
        return (jnp.transpose(w_hwio, (3, 0, 1, 2))
                .reshape(cout, kh * kw * cin)
                .astype(jnp.bfloat16))

    def w_spec(cout, cin):
        return pl.BlockSpec((cout, KSIZE * KSIZE * cin), lambda g: (0, 0))

    def b_spec(cout):
        return pl.BlockSpec((cout, 1), lambda g: (0, 0))

    in_specs = [pl.BlockSpec((pl.Squeezed(), in_ch, HWT), lambda g: (g, 0, 0)),
                pl.BlockSpec((KSIZE * KSIZE, HWT), lambda g: (0, 0))]
    args = [x_flat, masks]
    conv_dims = []

    if has_trans:
        wt, bt = params["trans"]
        in_specs += [w_spec(out_ch, in_ch), b_spec(out_ch)]
        args += [w_pack(wt), bt.reshape(out_ch, 1)]
        conv_dims.append((in_ch, out_ch))
    w0, b0 = params["conv0"]
    w1, b1 = params["conv1"]
    in_specs += [w_spec(inter_ch, out_ch), b_spec(inter_ch),
                 w_spec(out_ch, inter_ch), b_spec(out_ch)]
    args += [w_pack(w0), b0.reshape(inter_ch, 1),
             w_pack(w1), b1.reshape(out_ch, 1)]
    conv_dims += [(out_ch, inter_ch), (inter_ch, out_ch)]

    flops = sum(2 * KSIZE * KSIZE * ci * co * N * HW for ci, co in conv_dims)
    bytes_accessed = (x_flat.size * x_flat.dtype.itemsize
                      + N * out_ch * HW * x_nchw.dtype.itemsize
                      + masks.size * 4
                      + sum(KSIZE * KSIZE * ci * co * 2 + co * 4
                            for ci, co in conv_dims))

    out = pl.pallas_call(
        _make_crb_kernel(W, HWT, has_trans),
        out_shape=jax.ShapeDtypeStruct((G, out_ch, HWT), x_nchw.dtype),
        grid_spec=pltpu.PrefetchScalarGridSpec(
            num_scalar_prefetch=0,
            grid=(G,),
            in_specs=in_specs,
            out_specs=pl.BlockSpec((pl.Squeezed(), out_ch, HWT),
                                   lambda g: (g, 0, 0)),
        ),
        compiler_params=pltpu.CompilerParams(
            dimension_semantics=("parallel",)),
        cost_estimate=pl.CostEstimate(flops=flops, transcendentals=0,
                                      bytes_accessed=bytes_accessed),
    )(*args)
    return (out.reshape(G, out_ch, B, HW)
            .transpose(0, 2, 1, 3)
            .reshape(N, out_ch, H, W))


class CRBPallas:
    """JAX/Pallas port of the CRB residual block (forward only)."""

    def __init__(self, in_ch, inter_ch, out_ch, key):
        self.in_ch, self.inter_ch, self.out_ch = in_ch, inter_ch, out_ch
        keys = jax.random.split(key, 6)

        def init_conv(kw_key, kb_key, cin, cout):
            # Deterministic synthetic init (fan-in scaled normal), HWIO layout.
            scale = 1.0 / jnp.sqrt(cin * KSIZE * KSIZE)
            w = scale * jax.random.normal(kw_key, (KSIZE, KSIZE, cin, cout), jnp.float32)
            b = 0.1 * jax.random.normal(kb_key, (cout,), jnp.float32)
            return w, b

        self.params = {}
        if in_ch != out_ch:
            self.params["trans"] = init_conv(keys[0], keys[1], in_ch, out_ch)
        self.params["conv0"] = init_conv(keys[2], keys[3], out_ch, inter_ch)
        self.params["conv1"] = init_conv(keys[4], keys[5], inter_ch, out_ch)

    def __call__(self, x_nchw):
        return crb_forward_pallas(x_nchw, self.params,
                                  self.in_ch, self.inter_ch, self.out_ch)


# ---------------- pure-JAX reference (for the self-test) ----------------

def _conv_ref(x_nhwc, w_hwio, b):
    y = jax.lax.conv_general_dilated(
        x_nhwc, w_hwio, window_strides=(1, 1), padding="SAME",
        dimension_numbers=("NHWC", "HWIO", "NHWC"))
    return jnp.maximum(y + b[None, None, None, :], 0.0)


def _crb_ref(module, x_nchw):
    x = jnp.transpose(x_nchw, (0, 2, 3, 1))
    if module.in_ch != module.out_ch:
        wt, bt = module.params["trans"]
        x = _conv_ref(x, wt, bt)
    w0, b0 = module.params["conv0"]
    xi = _conv_ref(x, w0, b0)
    w1, b1 = module.params["conv1"]
    out = x + _conv_ref(xi, w1, b1)
    return jnp.transpose(out, (0, 3, 1, 2))


def _check(out, ref, name):
    # bf16 MXU operands (f32 accumulation) vs. pure-f32 reference -> loosened tolerance.
    max_err = float(jnp.max(jnp.abs(out - ref)))
    rel = float(jnp.linalg.norm(out - ref) / (jnp.linalg.norm(ref) + 1e-12))
    assert jnp.allclose(out, ref, atol=1e-1, rtol=1e-1), (name, max_err)
    assert rel < 5e-2, (name, rel)


if __name__ == "__main__":
    key = jax.random.PRNGKey(0)
    k_x, k_p, k_x2, k_p2 = jax.random.split(key, 4)

    # Case 1: InChannel != OutChannel (trans branch).  N > 2 and non-square H, W so the
    # batch-into-lanes packing and cross-image mask logic are exercised (B=2, grid=2).
    N, IN_CH, INTER_CH, OUT_CH, H, W = 4, 3, 8, 4, 16, 12
    x = jax.random.normal(k_x, (N, IN_CH, H, W), jnp.float32)       # NCHW like PyTorch
    crb = CRBPallas(IN_CH, INTER_CH, OUT_CH, k_p)
    out = jax.block_until_ready(crb(x))
    ref = jax.block_until_ready(_crb_ref(crb, x))
    assert out.shape == (N, OUT_CH, H, W), out.shape
    _check(out, ref, "trans")

    # Case 2: InChannel == OutChannel (no trans conv; residual is the raw input).
    H2, W2 = 8, 16
    x2 = jax.random.normal(k_x2, (N, OUT_CH, H2, W2), jnp.float32)
    crb2 = CRBPallas(OUT_CH, INTER_CH, OUT_CH, k_p2)
    out2 = jax.block_until_ready(crb2(x2))
    ref2 = jax.block_until_ready(_crb_ref(crb2, x2))
    assert out2.shape == (N, OUT_CH, H2, W2), out2.shape
    _check(out2, ref2, "no_trans")

    print("KERNEL_OK")
</pallas_src>

<mosaic_0001>
module attributes {stable_mosaic.version = 11 : i64} {
  func.func @kernel(%arg0: i32, %arg1: memref<1x3x384xf32, #tpu.memory_space<vmem>>, %arg2: memref<9x384xf32, #tpu.memory_space<vmem>>, %arg3: memref<4x27xbf16, #tpu.memory_space<vmem>>, %arg4: memref<4x1xf32, #tpu.memory_space<vmem>>, %arg5: memref<8x36xbf16, #tpu.memory_space<vmem>>, %arg6: memref<8x1xf32, #tpu.memory_space<vmem>>, %arg7: memref<4x72xbf16, #tpu.memory_space<vmem>>, %arg8: memref<4x1xf32, #tpu.memory_space<vmem>>, %arg9: memref<1x4x384xf32, #tpu.memory_space<vmem>>) attributes {dimension_semantics = [#tpu.dimension_semantics<parallel>], iteration_bounds = array<i64: 2>, scalar_prefetch = 0 : i64, scratch_operands = 0 : i64, tpu.core_type = #tpu.core_type<tc>, window_params = [{transform_indices = @transform_0, window_bounds = array<i64: 1, 3, 384>}, {pipeline_mode = #tpu.pipeline_mode<synchronous>, transform_indices = @transform_1, window_bounds = array<i64: 9, 384>}, {pipeline_mode = #tpu.pipeline_mode<synchronous>, transform_indices = @transform_2, window_bounds = array<i64: 4, 27>}, {pipeline_mode = #tpu.pipeline_mode<synchronous>, transform_indices = @transform_3, window_bounds = array<i64: 4, 1>}, {pipeline_mode = #tpu.pipeline_mode<synchronous>, transform_indices = @transform_4, window_bounds = array<i64: 8, 36>}, {pipeline_mode = #tpu.pipeline_mode<synchronous>, transform_indices = @transform_5, window_bounds = array<i64: 8, 1>}, {pipeline_mode = #tpu.pipeline_mode<synchronous>, transform_indices = @transform_6, window_bounds = array<i64: 4, 72>}, {pipeline_mode = #tpu.pipeline_mode<synchronous>, transform_indices = @transform_7, window_bounds = array<i64: 4, 1>}, {transform_indices = @transform_8, window_bounds = array<i64: 1, 4, 384>}]} {
    %c0 = arith.constant 0 : index
    %c0_0 = arith.constant 0 : index
    %0 = vector.load %arg2[%c0, %c0_0] : memref<9x384xf32, #tpu.memory_space<vmem>>, vector<9x384xf32>
    %c0_1 = arith.constant 0 : index
    %c0_2 = arith.constant 0 : index
    %c0_3 = arith.constant 0 : index
    %1 = vector.load %arg1[%c0_1, %c0_2, %c0_3] : memref<1x3x384xf32, #tpu.memory_space<vmem>>, vector<1x3x384xf32>
    %2 = vector.shape_cast %1 : vector<1x3x384xf32> to vector<3x384xf32>
    %c13_i32 = arith.constant 13 : i32
    %3 = tpu.dynamic_rotate %2 by %c13_i32 dim 1 : vector<3x384xf32>, i32 -> vector<3x384xf32>
    %4 = vector.extract_strided_slice %0 {offsets = [0, 0], sizes = [1, 384], strides = [1, 1]} : vector<9x384xf32> to vector<1x384xf32>
    %5 = vector.broadcast %4 : vector<1x384xf32> to vector<3x384xf32>
    %6 = arith.mulf %3, %5 : vector<3x384xf32>
    %c12_i32 = arith.constant 12 : i32
    %7 = tpu.dynamic_rotate %2 by %c12_i32 dim 1 : vector<3x384xf32>, i32 -> vector<3x384xf32>
    %8 = vector.extract_strided_slice %0 {offsets = [1, 0], sizes = [1, 384], strides = [1, 1]} : vector<9x384xf32> to vector<1x384xf32>
    %9 = vector.broadcast %8 : vector<1x384xf32> to vector<3x384xf32>
    %10 = arith.mulf %7, %9 : vector<3x384xf32>
    %c11_i32 = arith.constant 11 : i32
    %11 = tpu.dynamic_rotate %2 by %c11_i32 dim 1 : vector<3x384xf32>, i32 -> vector<3x384xf32>
    %12 = vector.extract_strided_slice %0 {offsets = [2, 0], sizes = [1, 384], strides = [1, 1]} : vector<9x384xf32> to vector<1x384xf32>
    %13 = vector.broadcast %12 : vector<1x384xf32> to vector<3x384xf32>
    %14 = arith.mulf %11, %13 : vector<3x384xf32>
    %c1_i32 = arith.constant 1 : i32
    %15 = tpu.dynamic_rotate %2 by %c1_i32 dim 1 : vector<3x384xf32>, i32 -> vector<3x384xf32>
    %16 = vector.extract_strided_slice %0 {offsets = [3, 0], sizes = [1, 384], strides = [1, 1]} : vector<9x384xf32> to vector<1x384xf32>
    %17 = vector.broadcast %16 : vector<1x384xf32> to vector<3x384xf32>
    %18 = arith.mulf %15, %17 : vector<3x384xf32>
    %c383_i32 = arith.constant 383 : i32
    %19 = tpu.dynamic_rotate %2 by %c383_i32 dim 1 : vector<3x384xf32>, i32 -> vector<3x384xf32>
    %20 = vector.extract_strided_slice %0 {offsets = [5, 0], sizes = [1, 384], strides = [1, 1]} : vector<9x384xf32> to vector<1x384xf32>
    %21 = vector.broadcast %20 : vector<1x384xf32> to vector<3x384xf32>
    %22 = arith.mulf %19, %21 : vector<3x384xf32>
    %c373_i32 = arith.constant 373 : i32
    %23 = tpu.dynamic_rotate %2 by %c373_i32 dim 1 : vector<3x384xf32>, i32 -> vector<3x384xf32>
    %24 = vector.extract_strided_slice %0 {offsets = [6, 0], sizes = [1, 384], strides = [1, 1]} : vector<9x384xf32> to vector<1x384xf32>
    %25 = vector.broadcast %24 : vector<1x384xf32> to vector<3x384xf32>
    %26 = arith.mulf %23, %25 : vector<3x384xf32>
    %c372_i32 = arith.constant 372 : i32
    %27 = tpu.dynamic_rotate %2 by %c372_i32 dim 1 : vector<3x384xf32>, i32 -> vector<3x384xf32>
    %28 = vector.extract_strided_slice %0 {offsets = [7, 0], sizes = [1, 384], strides = [1, 1]} : vector<9x384xf32> to vector<1x384xf32>
    %29 = vector.broadcast %28 : vector<1x384xf32> to vector<3x384xf32>
    %30 = arith.mulf %27, %29 : vector<3x384xf32>
    %c371_i32 = arith.constant 371 : i32
    %31 = tpu.dynamic_rotate %2 by %c371_i32 dim 1 : vector<3x384xf32>, i32 -> vector<3x384xf32>
    %32 = vector.extract_strided_slice %0 {offsets = [8, 0], sizes = [1, 384], strides = [1, 1]} : vector<9x384xf32> to vector<1x384xf32>
    %33 = vector.broadcast %32 : vector<1x384xf32> to vector<3x384xf32>
    %34 = arith.mulf %31, %33 : vector<3x384xf32>
    %35 = tpu.concatenate %6, %10, %14, %18, %2, %22, %26, %30, %34 in 0 : vector<3x384xf32>, vector<3x384xf32>, vector<3x384xf32>, vector<3x384xf32>, vector<3x384xf32>, vector<3x384xf32>, vector<3x384xf32>, vector<3x384xf32>, vector<3x384xf32> -> vector<27x384xf32>
    %36 = arith.truncf %35 : vector<27x384xf32> to vector<27x384xbf16>
    %c0_4 = arith.constant 0 : index
    %c0_5 = arith.constant 0 : index
    %37 = vector.load %arg3[%c0_4, %c0_5] : memref<4x27xbf16, #tpu.memory_space<vmem>>, vector<4x27xbf16>
    %cst = arith.constant dense<0.000000e+00> : vector<4x384xf32>
    %38 = tpu.matmul %37, %36, %cst {dimension_numbers = #tpu.dot_dimension_numbers<[1], [0], [0], [1], [0, 0, 1, 1], [], []>} : vector<4x27xbf16>, vector<27x384xbf16>, vector<4x384xf32> -> vector<4x384xf32>
    %c0_6 = arith.constant 0 : index
    %c0_7 = arith.constant 0 : index
    %39 = vector.load %arg4[%c0_6, %c0_7] : memref<4x1xf32, #tpu.memory_space<vmem>>, vector<4x1xf32>
    %40 = vector.broadcast %39 : vector<4x1xf32> to vector<4x384xf32>
    %41 = arith.addf %38, %40 : vector<4x384xf32>
    %cst_8 = arith.constant 0.000000e+00 : f32
    %42 = vector.broadcast %cst_8 : f32 to vector<4x384xf32>
    %43 = arith.maximumf %41, %42 : vector<4x384xf32>
    %c13_i32_9 = arith.constant 13 : i32
    %44 = tpu.dynamic_rotate %43 by %c13_i32_9 dim 1 : vector<4x384xf32>, i32 -> vector<4x384xf32>
    %45 = vector.extract_strided_slice %0 {offsets = [0, 0], sizes = [1, 384], strides = [1, 1]} : vector<9x384xf32> to vector<1x384xf32>
    %46 = vector.broadcast %45 : vector<1x384xf32> to vector<4x384xf32>
    %47 = arith.mulf %44, %46 : vector<4x384xf32>
    %c12_i32_10 = arith.constant 12 : i32
    %48 = tpu.dynamic_rotate %43 by %c12_i32_10 dim 1 : vector<4x384xf32>, i32 -> vector<4x384xf32>
    %49 = vector.extract_strided_slice %0 {offsets = [1, 0], sizes = [1, 384], strides = [1, 1]} : vector<9x384xf32> to vector<1x384xf32>
    %50 = vector.broadcast %49 : vector<1x384xf32> to vector<4x384xf32>
    %51 = arith.mulf %48, %50 : vector<4x384xf32>
    %c11_i32_11 = arith.constant 11 : i32
    %52 = tpu.dynamic_rotate %43 by %c11_i32_11 dim 1 : vector<4x384xf32>, i32 -> vector<4x384xf32>
    %53 = vector.extract_strided_slice %0 {offsets = [2, 0], sizes = [1, 384], strides = [1, 1]} : vector<9x384xf32> to vector<1x384xf32>
    %54 = vector.broadcast %53 : vector<1x384xf32> to vector<4x384xf32>
    %55 = arith.mulf %52, %54 : vector<4x384xf32>
    %c1_i32_12 = arith.constant 1 : i32
    %56 = tpu.dynamic_rotate %43 by %c1_i32_12 dim 1 : vector<4x384xf32>, i32 -> vector<4x384xf32>
    %57 = vector.extract_strided_slice %0 {offsets = [3, 0], sizes = [1, 384], strides = [1, 1]} : vector<9x384xf32> to vector<1x384xf32>
    %58 = vector.broadcast %57 : vector<1x384xf32> to vector<4x384xf32>
    %59 = arith.mulf %56, %58 : vector<4x384xf32>
    %c383_i32_13 = arith.constant 383 : i32
    %60 = tpu.dynamic_rotate %43 by %c383_i32_13 dim 1 : vector<4x384xf32>, i32 -> vector<4x384xf32>
    %61 = vector.extract_strided_slice %0 {offsets = [5, 0], sizes = [1, 384], strides = [1, 1]} : vector<9x384xf32> to vector<1x384xf32>
    %62 = vector.broadcast %61 : vector<1x384xf32> to vector<4x384xf32>
    %63 = arith.mulf %60, %62 : vector<4x384xf32>
    %c373_i32_14 = arith.constant 373 : i32
    %64 = tpu.dynamic_rotate %43 by %c373_i32_14 dim 1 : vector<4x384xf32>, i32 -> vector<4x384xf32>
    %65 = vector.extract_strided_slice %0 {offsets = [6, 0], sizes = [1, 384], strides = [1, 1]} : vector<9x384xf32> to vector<1x384xf32>
    %66 = vector.broadcast %65 : vector<1x384xf32> to vector<4x384xf32>
    %67 = arith.mulf %64, %66 : vector<4x384xf32>
    %c372_i32_15 = arith.constant 372 : i32
    %68 = tpu.dynamic_rotate %43 by %c372_i32_15 dim 1 : vector<4x384xf32>, i32 -> vector<4x384xf32>
    %69 = vector.extract_strided_slice %0 {offsets = [7, 0], sizes = [1, 384], strides = [1, 1]} : vector<9x384xf32> to vector<1x384xf32>
    %70 = vector.broadcast %69 : vector<1x384xf32> to vector<4x384xf32>
    %71 = arith.mulf %68, %70 : vector<4x384xf32>
    %c371_i32_16 = arith.constant 371 : i32
    %72 = tpu.dynamic_rotate %43 by %c371_i32_16 dim 1 : vector<4x384xf32>, i32 -> vector<4x384xf32>
    %73 = vector.extract_strided_slice %0 {offsets = [8, 0], sizes = [1, 384], strides = [1, 1]} : vector<9x384xf32> to vector<1x384xf32>
    %74 = vector.broadcast %73 : vector<1x384xf32> to vector<4x384xf32>
    %75 = arith.mulf %72, %74 : vector<4x384xf32>
    %76 = tpu.concatenate %47, %51, %55, %59, %43, %63, %67, %71, %75 in 0 : vector<4x384xf32>, vector<4x384xf32>, vector<4x384xf32>, vector<4x384xf32>, vector<4x384xf32>, vector<4x384xf32>, vector<4x384xf32>, vector<4x384xf32>, vector<4x384xf32> -> vector<36x384xf32>
    %77 = arith.truncf %76 : vector<36x384xf32> to vector<36x384xbf16>
    %c0_17 = arith.constant 0 : index
    %c0_18 = arith.constant 0 : index
    %78 = vector.load %arg5[%c0_17, %c0_18] : memref<8x36xbf16, #tpu.memory_space<vmem>>, vector<8x36xbf16>
    %cst_19 = arith.constant dense<0.000000e+00> : vector<8x384xf32>
    %79 = tpu.matmul %78, %77, %cst_19 {dimension_numbers = #tpu.dot_dimension_numbers<[1], [0], [0], [1], [0, 0, 1, 1], [], []>} : vector<8x36xbf16>, vector<36x384xbf16>, vector<8x384xf32> -> vector<8x384xf32>
    %c0_20 = arith.constant 0 : index
    %c0_21 = arith.constant 0 : index
    %80 = vector.load %arg6[%c0_20, %c0_21] : memref<8x1xf32, #tpu.memory_space<vmem>>, vector<8x1xf32>
    %81 = vector.broadcast %80 : vector<8x1xf32> to vector<8x384xf32>
    %82 = arith.addf %79, %81 : vector<8x384xf32>
    %cst_22 = arith.constant 0.000000e+00 : f32
    %83 = vector.broadcast %cst_22 : f32 to vector<8x384xf32>
    %84 = arith.maximumf %82, %83 : vector<8x384xf32>
    %c13_i32_23 = arith.constant 13 : i32
    %85 = tpu.dynamic_rotate %84 by %c13_i32_23 dim 1 : vector<8x384xf32>, i32 -> vector<8x384xf32>
    %86 = vector.extract_strided_slice %0 {offsets = [0, 0], sizes = [1, 384], strides = [1, 1]} : vector<9x384xf32> to vector<1x384xf32>
    %87 = vector.broadcast %86 : vector<1x384xf32> to vector<8x384xf32>
    %88 = arith.mulf %85, %87 : vector<8x384xf32>
    %c12_i32_24 = arith.constant 12 : i32
    %89 = tpu.dynamic_rotate %84 by %c12_i32_24 dim 1 : vector<8x384xf32>, i32 -> vector<8x384xf32>
    %90 = vector.extract_strided_slice %0 {offsets = [1, 0], sizes = [1, 384], strides = [1, 1]} : vector<9x384xf32> to vector<1x384xf32>
    %91 = vector.broadcast %90 : vector<1x384xf32> to vector<8x384xf32>
    %92 = arith.mulf %89, %91 : vector<8x384xf32>
    %c11_i32_25 = arith.constant 11 : i32
    %93 = tpu.dynamic_rotate %84 by %c11_i32_25 dim 1 : vector<8x384xf32>, i32 -> vector<8x384xf32>
    %94 = vector.extract_strided_slice %0 {offsets = [2, 0], sizes = [1, 384], strides = [1, 1]} : vector<9x384xf32> to vector<1x384xf32>
    %95 = vector.broadcast %94 : vector<1x384xf32> to vector<8x384xf32>
    %96 = arith.mulf %93, %95 : vector<8x384xf32>
    %c1_i32_26 = arith.constant 1 : i32
    %97 = tpu.dynamic_rotate %84 by %c1_i32_26 dim 1 : vector<8x384xf32>, i32 -> vector<8x384xf32>
    %98 = vector.extract_strided_slice %0 {offsets = [3, 0], sizes = [1, 384], strides = [1, 1]} : vector<9x384xf32> to vector<1x384xf32>
    %99 = vector.broadcast %98 : vector<1x384xf32> to vector<8x384xf32>
    %100 = arith.mulf %97, %99 : vector<8x384xf32>
    %c383_i32_27 = arith.constant 383 : i32
    %101 = tpu.dynamic_rotate %84 by %c383_i32_27 dim 1 : vector<8x384xf32>, i32 -> vector<8x384xf32>
    %102 = vector.extract_strided_slice %0 {offsets = [5, 0], sizes = [1, 384], strides = [1, 1]} : vector<9x384xf32> to vector<1x384xf32>
    %103 = vector.broadcast %102 : vector<1x384xf32> to vector<8x384xf32>
    %104 = arith.mulf %101, %103 : vector<8x384xf32>
    %c373_i32_28 = arith.constant 373 : i32
    %105 = tpu.dynamic_rotate %84 by %c373_i32_28 dim 1 : vector<8x384xf32>, i32 -> vector<8x384xf32>
    %106 = vector.extract_strided_slice %0 {offsets = [6, 0], sizes = [1, 384], strides = [1, 1]} : vector<9x384xf32> to vector<1x384xf32>
    %107 = vector.broadcast %106 : vector<1x384xf32> to vector<8x384xf32>
    %108 = arith.mulf %105, %107 : vector<8x384xf32>
    %c372_i32_29 = arith.constant 372 : i32
    %109 = tpu.dynamic_rotate %84 by %c372_i32_29 dim 1 : vector<8x384xf32>, i32 -> vector<8x384xf32>
    %110 = vector.extract_strided_slice %0 {offsets = [7, 0], sizes = [1, 384], strides = [1, 1]} : vector<9x384xf32> to vector<1x384xf32>
    %111 = vector.broadcast %110 : vector<1x384xf32> to vector<8x384xf32>
    %112 = arith.mulf %109, %111 : vector<8x384xf32>
    %c371_i32_30 = arith.constant 371 : i32
    %113 = tpu.dynamic_rotate %84 by %c371_i32_30 dim 1 : vector<8x384xf32>, i32 -> vector<8x384xf32>
    %114 = vector.extract_strided_slice %0 {offsets = [8, 0], sizes = [1, 384], strides = [1, 1]} : vector<9x384xf32> to vector<1x384xf32>
    %115 = vector.broadcast %114 : vector<1x384xf32> to vector<8x384xf32>
    %116 = arith.mulf %113, %115 : vector<8x384xf32>
    %117 = tpu.concatenate %88, %92, %96, %100, %84, %104, %108, %112, %116 in 0 : vector<8x384xf32>, vector<8x384xf32>, vector<8x384xf32>, vector<8x384xf32>, vector<8x384xf32>, vector<8x384xf32>, vector<8x384xf32>, vector<8x384xf32>, vector<8x384xf32> -> vector<72x384xf32>
    %118 = arith.truncf %117 : vector<72x384xf32> to vector<72x384xbf16>
    %c0_31 = arith.constant 0 : index
    %c0_32 = arith.constant 0 : index
    %119 = vector.load %arg7[%c0_31, %c0_32] : memref<4x72xbf16, #tpu.memory_space<vmem>>, vector<4x72xbf16>
    %cst_33 = arith.constant dense<0.000000e+00> : vector<4x384xf32>
    %120 = tpu.matmul %119, %118, %cst_33 {dimension_numbers = #tpu.dot_dimension_numbers<[1], [0], [0], [1], [0, 0, 1, 1], [], []>} : vector<4x72xbf16>, vector<72x384xbf16>, vector<4x384xf32> -> vector<4x384xf32>
    %c0_34 = arith.constant 0 : index
    %c0_35 = arith.constant 0 : index
    %121 = vector.load %arg8[%c0_34, %c0_35] : memref<4x1xf32, #tpu.memory_space<vmem>>, vector<4x1xf32>
    %122 = vector.broadcast %121 : vector<4x1xf32> to vector<4x384xf32>
    %123 = arith.addf %120, %122 : vector<4x384xf32>
    %cst_36 = arith.constant 0.000000e+00 : f32
    %124 = vector.broadcast %cst_36 : f32 to vector<4x384xf32>
    %125 = arith.maximumf %123, %124 : vector<4x384xf32>
    %126 = arith.addf %43, %125 : vector<4x384xf32>
    %c0_37 = arith.constant 0 : index
    %c0_38 = arith.constant 0 : index
    %c0_39 = arith.constant 0 : index
    %127 = vector.load %arg9[%c0_37, %c0_38, %c0_39] : memref<1x4x384xf32, #tpu.memory_space<vmem>>, vector<1x4x384xf32>
    %128 = vector.shape_cast %127 : vector<1x4x384xf32> to vector<4x384xf32>
    %129 = vector.shape_cast %126 : vector<4x384xf32> to vector<1x4x384xf32>
    tpu.vector_store %arg9[%c0_37, %c0_38, %c0_39], %129 {strides = array<i32>} : memref<1x4x384xf32, #tpu.memory_space<vmem>>, vector<1x4x384xf32>,
    return
  }
  func.func @transform_0(%arg0: i32) -> (i32, i32, i32) {
    %c0_i32 = arith.constant 0 : i32
    %c0_i32_0 = arith.constant 0 : i32
    %c0_i32_1 = arith.constant 0 : i32
    return %arg0, %c0_i32, %c0_i32_0 : i32, i32, i32
  }
  func.func @transform_1(%arg0: i32) -> (i32, i32) {
    %c0_i32 = arith.constant 0 : i32
    %c0_i32_0 = arith.constant 0 : i32
    %c0_i32_1 = arith.constant 0 : i32
    return %c0_i32, %c0_i32_0 : i32, i32
  }
  func.func @transform_2(%arg0: i32) -> (i32, i32) {
    %c0_i32 = arith.constant 0 : i32
    %c0_i32_0 = arith.constant 0 : i32
    %c0_i32_1 = arith.constant 0 : i32
    return %c0_i32, %c0_i32_0 : i32, i32
  }
  func.func @transform_3(%arg0: i32) -> (i32, i32) {
    %c0_i32 = arith.constant 0 : i32
    %c0_i32_0 = arith.constant 0 : i32
    %c0_i32_1 = arith.constant 0 : i32
    return %c0_i32, %c0_i32_0 : i32, i32
  }
  func.func @transform_4(%arg0: i32) -> (i32, i32) {
    %c0_i32 = arith.constant 0 : i32
    %c0_i32_0 = arith.constant 0 : i32
    %c0_i32_1 = arith.constant 0 : i32
    return %c0_i32, %c0_i32_0 : i32, i32
  }
  func.func @transform_5(%arg0: i32) -> (i32, i32) {
    %c0_i32 = arith.constant 0 : i32
    %c0_i32_0 = arith.constant 0 : i32
    %c0_i32_1 = arith.constant 0 : i32
    return %c0_i32, %c0_i32_0 : i32, i32
  }
  func.func @transform_6(%arg0: i32) -> (i32, i32) {
    %c0_i32 = arith.constant 0 : i32
    %c0_i32_0 = arith.constant 0 : i32
    %c0_i32_1 = arith.constant 0 : i32
    return %c0_i32, %c0_i32_0 : i32, i32
  }
  func.func @transform_7(%arg0: i32) -> (i32, i32) {
    %c0_i32 = arith.constant 0 : i32
    %c0_i32_0 = arith.constant 0 : i32
    %c0_i32_1 = arith.constant 0 : i32
    return %c0_i32, %c0_i32_0 : i32, i32
  }
  func.func @transform_8(%arg0: i32) -> (i32, i32, i32) {
    %c0_i32 = arith.constant 0 : i32
    %c0_i32_0 = arith.constant 0 : i32
    %c0_i32_1 = arith.constant 0 : i32
    return %arg0, %c0_i32, %c0_i32_0 : i32, i32, i32
  }
}

</mosaic_0001>

<bundles_post_ra>
// kernel: tpu_custom_call.1
= control target key start
LH: loop header
LB: loop body
LE: loop exit
PB: predicated region body
PF: predicated region fallthrough
CT: control target
= control target key end

     0   :  { %13 = vsyncpa [#allocation3], 0  ;;  %s2215_s0 = inlined_call_operand.vmem [shape: f32[2,3,384], index: 0, kind: input, shape index: {}]   ;;  %s2216_s1 = inlined_call_operand.vmem [shape: f32[9,384], index: 1, kind: input, shape index: {}]   ;;  %s2217_s2 = inlined_call_operand.vmem [shape: bf16[4,27], index: 2, kind: input, shape index: {}]   ;;  %s2218_s3 = inlined_call_operand.vmem [shape: f32[4,1], index: 3, kind: input, shape index: {}]   ;;  %s2219_s4 = inlined_call_operand.vmem [shape: bf16[8,36], index: 4, kind: input, shape index: {}]   ;;  %s2220_s5 = inlined_call_operand.vmem [shape: f32[8,1], index: 5, kind: input, shape index: {}]   ;;  %s2221_s6 = inlined_call_operand.vmem [shape: bf16[4,72], index: 6, kind: input, shape index: {}]   ;;  %s2222_s7 = inlined_call_operand.vmem [shape: f32[4,1], index: 7, kind: input, shape index: {}]   ;;  %s2223_s8 = inlined_call_operand.hbm [shape: f32[2,4,384], index: 8, kind: output, shape index: {}]  }
   0x1   :  { %15 = vsyncpa [#allocation3 + $0x1], 0  ;;  %s1515_s27 = smov 0   ;;  %s1517_s28 = smov 0  }
   0x2   :  { %s1519_s29 = smov 0   ;;  %s1521_s30 = smov 0  }
   0x3 LB: > { %s1536_s9 = sadd.s32 4294967295, %s1455_s30   ;;  %s1272_s10 = sadd.s32 4294967294, %s1455_s30   ;;  %s1455_s30 = sphi %s1521_s30, %s2229_s30   ;;  %s1451_s29 = sphi %s1519_s29, %s2228_s29   ;;  %s1447_s28 = sphi %s1517_s28, %s2227_s28   ;;  %s1443_s27 = sphi %s1515_s27, %s2226_s27  }
   0x4   : > { %s1540_s11 = sadd.s32 1, %s1455_s30   ;;  %s201_s12 = sadd.s32 1, %s1451_s29 }
   0x5   : > { %s198_s13 = ssub.s32 %s1455_s30, %s1540_s11  ;;  %p211_p0 = scmp.ne.s32.totalorder %s1451_s29, %s1447_s28 }
   0x6   : > { %p199_p1 = scmp.eq.s32.totalorder %s198_s13, 0  ;;  %p212_p2 = scmp.eq.s32.totalorder %s1536_s9, 1 }
   0x7   : > { %p217_p3 = scmp.ne.s32.totalorder %s1447_s28, %s1443_s27  ;;  %p218_p4 = scmp.eq.s32.totalorder %s1272_s10, 1 }
   0x8   : > { %s1551_s14 = scalar_select %p199_p1, %s1451_s29, %s201_s12  }
   0x9   : > { %p1553_p5 = por %p212_p2, %p211_p0  ;;  %p1557_p6 = por %p218_p4, %p217_p3 }
   0xa   : > { %p1275_p7 = scmp.ge.s32.totalorder %s1455_s30, 1  ;;  %p265_p8 = scmp.lt.s32.totalorder %s1455_s30, 3 }
   0xc   : > { %p266_p9 = pnand %p1275_p7, %p265_p8 }
   0xd   : > { %p299_p10 = scmp.lt.s32.totalorder (!%p266_p9), %s1536_s9, 1  ;;  %s1457_s22 = smov (!%p266_p9), 117  }
   0xe   : > { %269 = sbr.rel (%p266_p9) target bundleno = 1143 (0x477), region = 52  ;;  %s1458_s23 = smov (!%p266_p9), 127  }
   0xf   : > { %s1459_s24 = smov (!%p266_p9), 116   ;;  %s1460_s25 = smov (!%p266_p9), 115  }
  0x10   : > { %s1461_s26 = smov (!%p266_p9), 11   ;;  %s1463_s10 = smov (!%p266_p9), 1  }
  0x11   : > { %s1464_s12 = smov (!%p266_p9), 12   ;;  %s1465_s13 = smov (!%p266_p9), 13  }
  0x13   : > { %s300_s17 = scalar_select %p299_p10, %s1536_s9, 1  ;;  %v1462_v3 = vmov 0.0   ;;  %vm1466_vm0 = vmmov 0   ;;  %v1467_v4 = vmov 0   ;;  %v612_v5 = vld [vmem:[%s2218_s3] sm:$0xf]  ;;  %v323_v8 = vlaneseq }
  0x14   : > { %1304 = vmatprep.subr.bf16.mxu1 %v1462_v3  ;;  %1308 = vmatprep.mubr.msk.bf16.mxu1 %vm1466_vm0, %v1462_v3  ;;  %v1630_v13 = vld [vmem:[%s2216_s1 + $0x8] sm:$0xff]  ;;  %v1654_v26 = vld [vmem:[%s2216_s1 + $0x10] sm:$0xff]  ;;  %v1659_v27 = vld [vmem:[%s2216_s1] sm:$0xff]  ;;  %vm601_vm5 = vcmask 1044480   ;;  %vm581_vm6 = vcmask 1045504   ;;  %v1468_v52 = vmov 65535  }
  0x15   : > { %s1337_s18 = smul.u32 12, %s300_s17  ;;  %665 = vmatprep.mubr.bf16.mxu0 %v1467_v4  ;;  %1390 = vset.pattern.permute.xlu0 %v1467_v4  ;;  %v1623_v9 = vshrl.u32 %v323_v8, 7  ;;  %v1625_v12 = vand.u32 127, %v323_v8  ;;  %v1699_v47 = vld [vmem:[%s2216_s1 + $0x20] ss:$0 sm:$0xff]  ;;  %v622_v53 = vsel %vm601_vm5, 4294967295, %v1468_v52 }
  0x16   : > { %1391 = vset.pattern.permute.xlu1 %v1467_v4  ;;  %vm597_vm7 = vcmask 1041408   ;;  %vm585_vm10 = vcmask 1040384   ;;  %vm589_vm12 = vcmask 1043456   ;;  %vm577_vm14 = vcmask 1042432  }
  0x17   : > { %s303_s21 = scalar_lea.vmem %s2215_s0, %s1337_s18  ;;  %v481_v14 = vsub.s32 7, %v1623_v9  ;;  %v456_v15 = vsub.s32 6, %v1623_v9  ;;  %v431_v16 = vsub.s32 5, %v1623_v9  ;;  %vm450_vm1 = vcmp.lt.s32.totalorder %v1625_v12, 117 }
  0x18   : > { %v1568_v0 = vld [vmem:[%s303_s21 + $0x8] sm:$0x7]  ;;  %v1574_v1 = vld [vmem:[%s303_s21] sm:$0x77]  ;;  %vm425_vm2 = vcmp.lt.s32.totalorder %v1625_v12, 127  ;;  %vm475_vm3 = vcmp.lt.s32.totalorder %v1625_v12, 116 }
  0x19   : > { %448 = vrot.lane.b32.xlu1 %v1568_v0, %s1457_s22  ;;  %423 = vrot.lane.b32.xlu0 %v1568_v0, %s1458_s23  ;;  %v315_v2 = vcombine.high %v1574_v1, %v1574_v1  ;;  %v1638_v19 = vrot.slane %v1630_v13, %v456_v15  ;;  %v1641_v20 = vrot.slane %v1630_v13, %v431_v16  ;;  %vm500_vm4 = vcmp.lt.s32.totalorder %v1625_v12, 115 }
  0x1a   : > { %v1649_v23 = vrot.slane %v1630_v13, %v481_v14  ;;  %v1669_v32 = vrot.slane %v1654_v26, %v456_v15  ;;  %v1672_v33 = vrot.slane %v1654_v26, %v431_v16  ;;  %v1675_v34 = vrot.slane %v1659_v27, %v456_v15 }
  0x1b   : > { %v1678_v35 = vrot.slane %v1659_v27, %v431_v16  ;;  %v1681_v38 = vrot.slane %v1659_v27, %v481_v14  ;;  %v1684_v39 = vrot.slane %v1654_v26, %v481_v14  ;;  %v406_v8 = vsub.s32 3, %v1623_v9 }
  0x1c   : > { %vm400_vm8 = vcmp.lt.s32.totalorder %v1625_v12, 1  ;;  %vm375_vm9 = vcmp.lt.s32.totalorder %v1625_v12, 11  ;;  %vm350_vm11 = vcmp.lt.s32.totalorder %v1625_v12, 12  ;;  %vm325_vm13 = vcmp.lt.s32.totalorder %v1625_v12, 13 }
  0x1d   : > { %444 = vrot.lane.b32.xlu1 %v1574_v1, %s1457_s22  ;;  %419 = vrot.lane.b32.xlu0 %v1574_v1, %s1458_s23  ;;  %vm593_vm15 = vcmask 1046528  }
  0x21   : > { %446 = vrot.lane.b32.xlu1 %v315_v2, %s1457_s22  ;;  %421 = vrot.lane.b32.xlu0 %v315_v2, %s1458_s23 }
  0x25   : > { %473 = vrot.lane.b32.xlu1 %v1568_v0, %s1459_s24  ;;  %471 = vrot.lane.b32.xlu0 %v315_v2, %s1459_s24 }
  0x29   : > { %496 = vrot.lane.b32.xlu1 %v315_v2, %s1460_s25  ;;  %469 = vrot.lane.b32.xlu0 %v1574_v1, %s1459_s24 }
  0x2d   : > { %369 = vrot.lane.b32.xlu1 %v1574_v1, %s1461_s26  ;;  %498 = vrot.lane.b32.xlu0 %v1568_v0, %s1460_s25 }
  0x31   : > { %394 = vrot.lane.b32.xlu1 %v1574_v1, %s1463_s10  ;;  %371 = vrot.lane.b32.xlu0 %v315_v2, %s1461_s26 }
  0x35   : > { %494 = vrot.lane.b32.xlu1 %v1574_v1, %s1460_s25  ;;  %396 = vrot.lane.b32.xlu0 %v315_v2, %s1463_s10 }
  0x39   : > { %346 = vrot.lane.b32.xlu1 %v315_v2, %s1464_s12  ;;  %344 = vrot.lane.b32.xlu0 %v1574_v1, %s1464_s12 }
  0x3d   : > { %398 = vrot.lane.b32.xlu1 %v1568_v0, %s1463_s10  ;;  %373 = vrot.lane.b32.xlu0 %v1568_v0, %s1461_s26 }
  0x41   : > { %317 = vrot.lane.b32.xlu1 %v1574_v1, %s1465_s13  ;;  %348 = vrot.lane.b32.xlu0 %v1568_v0, %s1464_s12 }
  0x45   : > { %321 = vrot.lane.b32.xlu1 %v1568_v0, %s1465_s13  ;;  %319 = vrot.lane.b32.xlu0 %v315_v2, %s1465_s13  ;;  %v623_v2 = vsel %vm581_vm6, %v622_v53, 0 }
  0x49   : > { %615 = vperm.xlu0 %1390, %v612_v5  }
  0x8b   : > { %v449_v6 = vpop.permute.xlu1 %448  ;;  %v424_v7 = vpop.permute.xlu0 %423 }
  0x8f   : > { %v445_v10 = vpop.permute.xlu1 %444  ;;  %v420_v11 = vpop.permute.xlu0 %419 }
  0x90   : > { %v453_v40 = vsel %vm450_vm1, %v449_v6, %v445_v10  ;;  %v428_v41 = vsel %vm425_vm2, %v424_v7, %v420_v11 }
  0x91   : > { %v468_v54 = vmul.f32 %v1669_v32, %v453_v40  ;;  %v1710_v55 = vmul.f32 %v1672_v33, %v428_v41 }
  0x93   : > { %v447_v17 = vpop.permute.xlu1 %446  ;;  %v422_v18 = vpop.permute.xlu0 %421  ;;  %v555_v14 = vrot.slane %v1710_v55, 1  ;;  %v611_v55 = vld [vmem:[%s2217_s2] sm:$0x3] }
  0x94   : > { %v451_v21 = vsel %vm450_vm1, %v447_v17, %v449_v6  ;;  %v426_v22 = vsel %vm425_vm2, %v422_v18, %v424_v7  ;;  %v452_v44 = vsel %vm450_vm1, %v445_v10, %v447_v17  ;;  %v427_v45 = vsel %vm425_vm2, %v420_v11, %v422_v18  ;;  %v1734_v17 = vld [vmem:[%s2216_s1 + $0x18] ss:$0 sm:$0xff] }
  0x95   : > { %v467_v29 = vmul.f32 %v1638_v19, %v451_v21  ;;  %v1665_v30 = vmul.f32 %v1641_v20, %v426_v22  ;;  %v466_v57 = vmul.f32 %v1675_v34, %v452_v44  ;;  %v1716_v58 = vmul.f32 %v1678_v35, %v427_v45 }
  0x96   : > { %v564_v10 = vrot.slane %v468_v54, 6  ;;  %v381_v11 = vsub.s32 2, %v1623_v9 }
  0x97   : > { %v474_v24 = vpop.permute.xlu1 %473  ;;  %v472_v25 = vpop.permute.xlu0 %471  ;;  %v563_v42 = vrot.slane %v467_v29, 6  ;;  %v554_v43 = vrot.slane %v1665_v30, 1  ;;  %v562_v15 = vrot.slane %v466_v57, 6  ;;  %v553_v16 = vrot.slane %v1716_v58, 1 }
  0x98   : > { %v476_v28 = vsel %vm475_vm3, %v472_v25, %v474_v24  ;;  %v1744_v29 = vrot.slane %v1630_v13, %v406_v8 }
  0x99   : > { %v492_v31 = vmul.f32 %v1649_v23, %v476_v28  ;;  %v599_v60 = vsel %vm597_vm7, %v554_v43, %v563_v42 }
  0x9b   : > { %v497_v36 = vpop.permute.xlu1 %496  ;;  %v470_v37 = vpop.permute.xlu0 %469  ;;  %v572_v46 = vrot.slane %v492_v31, 3 }
  0x9c   : > { %v477_v48 = vsel %vm475_vm3, %v470_v37, %v472_v25  ;;  %v478_v49 = vsel %vm475_vm3, %v474_v24, %v470_v37  ;;  %v1739_v24 = vld [vmem:[%s2216_s1 + $0x28] ss:$0 sm:$0xff]  ;;  %v356_v25 = vsub.s32 1, %v1623_v9  ;;  %v1747_v37 = vrot.slane %v1630_v13, %v381_v11 }
  0x9d   : > { %v491_v61 = vmul.f32 %v1681_v38, %v477_v48  ;;  %v493_v62 = vmul.f32 %v1684_v39, %v478_v49  ;;  %v603_v63 = vsel %vm601_vm5, %v599_v60, %v572_v46  ;;  %v598_v46 = vsel %vm597_vm7, %v553_v16, %v562_v15 }
  0x9e   : > { %v600_v48 = vsel %vm597_vm7, %v555_v14, %v564_v10  ;;  %v1774_v60 = vrot.slane %v1659_v27, %v406_v8  ;;  %v1783_v10 = vrot.slane %v1654_v26, %v381_v11  ;;  %v1786_v15 = vrot.slane %v1659_v27, %v356_v25 }
  0x9f   : > { %v1705_v50 = vpop.permute.xlu1 %369  ;;  %v499_v51 = vpop.permute.xlu0 %498  ;;  %v571_v21 = vrot.slane %v491_v61, 3  ;;  %v573_v22 = vrot.slane %v493_v62, 3  ;;  %v1777_v61 = vrot.slane %v1654_v26, %v406_v8  ;;  %v1780_v62 = vrot.slane %v1659_v27, %v381_v11 }
  0xa0   : > { %v501_v56 = vsel %vm500_vm4, %v497_v36, %v499_v51  ;;  %v331_v8 = vsub.s32 0, %v1623_v9 }
  0xa1   : > { %v517_v59 = vmul.f32 %v1699_v47, %v501_v56  ;;  %v602_v49 = vsel %vm601_vm5, %v598_v46, %v571_v21  ;;  %v1790_v21 = vrot.slane %v1654_v26, %v356_v25 }
  0xa3   : > { %v395_v5 = vpop.permute.xlu1 %394  ;;  %v372_v6 = vpop.permute.xlu0 %371  ;;  %v609_v7 = vpack.c.bf16 %v517_v59, %v603_v63 }
  0xa4   : > { %v377_v52 = vsel %vm375_vm9, %v1705_v50, %v372_v6 }
  0xa5   : > { %v628_v18 = vand.u32 %v623_v2, %v609_v7 }
  0xa7   : > { %v495_v28 = vpop.permute.xlu1 %494  ;;  %645 = vmatprep.subr.bf16.mxu0 %v628_v18  ;;  %v397_v31 = vpop.permute.xlu0 %396  ;;  %v392_v18 = vmul.f32 %v1747_v37, %v377_v52 }
  0xa8   : > { %v502_v40 = vsel %vm500_vm4, %v495_v28, %v497_v36  ;;  %v503_v41 = vsel %vm500_vm4, %v499_v51, %v495_v28  ;;  %v402_v42 = vsel %vm400_vm8, %v395_v5, %v397_v31  ;;  %v1765_v36 = vrot.slane %v1630_v13, %v356_v25 }
  0xa9   : > { %v516_v44 = vmul.f32 %v1734_v17, %v502_v40  ;;  %v518_v45 = vmul.f32 %v1739_v24, %v503_v41  ;;  %v604_v51 = vsel %vm601_vm5, %v600_v48, %v573_v22  ;;  %v417_v53 = vmul.f32 %v1744_v29, %v402_v42 }
  0xaa   : > { %v547_v22 = vcombine.low %v1568_v0, %v1568_v0  ;;  %v546_v41 = vcombine.low %v1574_v1, %v1574_v1  ;;  %v532_v48 = vrot.slane %v392_v18, 2  ;;  %vm618_vm5 = vcmask 220160  }
  0xab   : > { %v347_v54 = vpop.permute.xlu1 %346  ;;  %v345_v56 = vpop.permute.xlu0 %344  ;;  %v608_v57 = vpack.c.bf16 %v516_v44, %v602_v49  ;;  %v610_v59 = vpack.c.bf16 %v518_v45, %v604_v51  ;;  %v541_v28 = vrot.slane %v417_v53, 7  ;;  %v1816_v49 = vrot.slane %v1659_v27, %v331_v8 }
  0xac   : > { %v1827_v27 = vrot.slane %v1654_v26, %v331_v8 }
  0xad   : > { %v625_v63 = vand.u32 %v623_v2, %v608_v57  ;;  %v631_v7 = vand.u32 %v623_v2, %v610_v59  ;;  %v352_v2 = vsel %vm350_vm11, %v345_v56, %v347_v54 }
  0xaf   : > { %v399_v40 = vpop.permute.xlu1 %398  ;;  %646 = vmatpush1.bf16.msra.mxu0 %v625_v63  ;;  %1305 = vmatpush3.bf16.msra.mxu1 %v631_v7  ;;  %v374_v11 = vpop.permute.xlu0 %373  ;;  %v587_v63 = vsel %vm585_vm10, %v532_v48, %v541_v28 }
  0xb0   : > { %v401_v25 = vsel %vm400_vm8, %v397_v31, %v399_v40  ;;  %v403_v9 = vsel %vm400_vm8, %v399_v40, %v395_v5  ;;  %v376_v0 = vsel %vm375_vm9, %v372_v6, %v374_v11  ;;  %v378_v42 = vsel %vm375_vm9, %v374_v11, %v1705_v50  ;;  %1306 = vmatprep.subr.bf16.mxu1 %v1462_v3 }
  0xb1   : > { %v416_v44 = vmul.f32 %v1774_v60, %v403_v9  ;;  %v418_v45 = vmul.f32 %v1777_v61, %v401_v25  ;;  %v391_v46 = vmul.f32 %v1780_v62, %v378_v42  ;;  %v393_v31 = vmul.f32 %v1783_v10, %v376_v0 }
  0xb2   : > { %v367_v5 = vmul.f32 %v1765_v36, %v352_v2  ;;  %v1819_v6 = vrot.slane %v1630_v13, %v331_v8 }
  0xb3   : > { %v540_v50 = vrot.slane %v416_v44, 7  ;;  %v542_v51 = vrot.slane %v418_v45, 7  ;;  %v531_v52 = vrot.slane %v391_v46, 2  ;;  %v533_v53 = vrot.slane %v393_v31, 2  ;;  %v318_v57 = vpop.permute.xlu1 %317  ;;  %v349_v59 = vpop.permute.xlu0 %348 }
  0xb4   : > { %v351_v7 = vsel %vm350_vm11, %v347_v54, %v349_v59  ;;  %v353_v18 = vsel %vm350_vm11, %v349_v59, %v345_v56  ;;  %v523_v28 = vrot.slane %v367_v5, 5  ;;  %v591_v54 = vsel %vm589_vm12, %v587_v63, %v1574_v1 }
  0xb5   : > { %v586_v13 = vsel %vm585_vm10, %v531_v52, %v540_v50  ;;  %v588_v2 = vsel %vm585_vm10, %v533_v53, %v542_v51  ;;  %v366_v40 = vmul.f32 %v1786_v15, %v353_v18  ;;  %v368_v11 = vmul.f32 %v1790_v21, %v351_v7 }
  0xb6   : > { %v592_v56 = vsel %vm589_vm12, %v588_v2, %v547_v22  ;;  %v590_v26 = vsel %vm589_vm12, %v586_v13, %v546_v41  ;;  %v595_v22 = vsel %vm593_vm15, %v591_v54, %v554_v43 }
  0xb7   : > { %v322_v25 = vpop.permute.xlu1 %321  ;;  %v320_v9 = vpop.permute.xlu0 %319  ;;  %v522_v8 = vrot.slane %v366_v40, 5  ;;  %v524_v45 = vrot.slane %v368_v11, 5  ;;  %v596_v50 = vsel %vm593_vm15, %v592_v56, %v555_v14  ;;  %v594_v30 = vsel %vm593_vm15, %v590_v26, %v553_v16  ;;  %v871_v26 = vld [vmem:[%s2220_s5] sm:$0xff] }
  0xb8   : > { %v328_v0 = vsel %vm325_vm13, %v322_v25, %v318_v57  ;;  %v326_v42 = vsel %vm325_vm13, %v320_v9, %v322_v25  ;;  %v327_v44 = vsel %vm325_vm13, %v318_v57, %v320_v9 }
  0xb9   : > { %v341_v46 = vmul.f32 %v1816_v49, %v328_v0  ;;  %v342_v31 = vmul.f32 %v1819_v6, %v327_v44  ;;  %v343_v1 = vmul.f32 %v1827_v27, %v326_v42 }
  0xbb   : > { %v579_v41 = vsel %vm577_vm14, %v342_v31, %v523_v28  ;;  %v580_v5 = vsel %vm577_vm14, %v343_v1, %v524_v45  ;;  %v578_v51 = vsel %vm577_vm14, %v341_v46, %v522_v8 }
  0xbc   : > { %v583_v57 = vsel %vm581_vm6, %v579_v41, %v532_v48  ;;  %v584_v59 = vsel %vm581_vm6, %v580_v5, %v533_v53  ;;  %v582_v63 = vsel %vm581_vm6, %v578_v51, %v531_v52  ;;  %vm877_vm6 = vcmask 293888  }
  0xbd   : > { %v606_v43 = vpack.c.bf16 %v595_v22, %v583_v57  ;;  %v607_v7 = vpack.c.bf16 %v596_v50, %v584_v59  ;;  %v605_v18 = vpack.c.bf16 %v594_v30, %v582_v63 }
  0xbf   : > { %647 = vmatprep.subr.bf16.mxu0 %v606_v43  ;;  %1307 = vmatpush3.bf16.msra.mxu1 %v607_v7 }
  0xc0   : > { %648 = vmatpush1.bf16.msra.mxu0 %v605_v18  ;;  %1312 = vmatprep.subr.bf16.mxu1 %v1462_v3 }
  0xc2   : > { %1309 = vmatmul.mubr.msk.bf16.vlgmr.msra.gmra.mxu1 %vm618_vm5, %v611_v55 }
  0xc3   : > { %1280 = vmatmul.mubr.msk.bf16.vlgmr.msra.gmra.mxu0 %vm618_vm5, %v611_v55  ;;  %1318 = vmatprep.mubr.msk.bf16.mxu1 %vm1466_vm0, %v1462_v3 }
  0xc4   : > { %922 = vmatprep.mubr.bf16.mxu0 %v1467_v4  ;;  %v616_v58 = vpop.permute.xlu0 %615 }
 0x182   : > { %v708_v14 = vpop.f32.mrf.mxu1 }
 0x183   : > { %v709_v16 = vadd.f32 %v708_v14, %v616_v58  ;;  %v667_v48 = vpop.f32.mrf.mxu0 }
 0x184   : > { %v1310_v52 = vpop.f32.mrf.mxu1  ;;  %v668_v13 = vadd.f32 %v667_v48, %v616_v58 }
 0x185   : > { %v1868_v53 = vmax.f32 %v709_v16, 0.0  ;;  %v669_v2 = vpop.f32.mrf.mxu0 }
 0x186   : > { %v711_v40 = vpop.f32.mrf.mxu1  ;;  %v1874_v25 = vmax.f32 %v668_v13, 0.0  ;;  %v670_v54 = vadd.f32 %v669_v2, %v616_v58 }
 0x187   : > { %v671_v11 = vpop.f32.mrf.mxu0  ;;  %757 = vrot.lane.b32.xlu1 %v1868_v53, %s1463_s10  ;;  %805 = vrot.lane.b32.xlu0 %v1868_v53, %s1460_s25 }
 0x188   : > { %v1311_v28 = vpop.f32.mrf.mxu1  ;;  %v1888_v56 = vmax.f32 %v670_v54, 0.0 }
 0x189   : > { %v672_v9 = vpop.f32.mrf.mxu0 }
 0x18b   : > { %769 = vrot.lane.b32.xlu0 %v1868_v53, %s1458_s23  ;;  %801 = vrot.lane.b32.xlu1 %v1874_v25, %s1460_s25 }
 0x18f   : > { %793 = vrot.lane.b32.xlu0 %v1868_v53, %s1459_s24  ;;  %765 = vrot.lane.b32.xlu1 %v1874_v25, %s1458_s23 }
 0x193   : > { %781 = vrot.lane.b32.xlu0 %v1868_v53, %s1457_s22  ;;  %777 = vrot.lane.b32.xlu1 %v1874_v25, %s1457_s22 }
 0x197   : > { %733 = vrot.lane.b32.xlu0 %v1868_v53, %s1464_s12  ;;  %803 = vrot.lane.b32.xlu1 %v1888_v56, %s1460_s25 }
 0x19b   : > { %789 = vrot.lane.b32.xlu0 %v1874_v25, %s1459_s24  ;;  %767 = vrot.lane.b32.xlu1 %v1888_v56, %s1458_s23 }
 0x19f   : > { %729 = vrot.lane.b32.xlu0 %v1874_v25, %s1464_s12  ;;  %791 = vrot.lane.b32.xlu1 %v1888_v56, %s1459_s24 }
 0x1a3   : > { %753 = vrot.lane.b32.xlu0 %v1874_v25, %s1463_s10  ;;  %779 = vrot.lane.b32.xlu1 %v1888_v56, %s1457_s22 }
 0x1a7   : > { %717 = vrot.lane.b32.xlu0 %v1874_v25, %s1465_s13  ;;  %731 = vrot.lane.b32.xlu1 %v1888_v56, %s1464_s12 }
 0x1ab   : > { %741 = vrot.lane.b32.xlu0 %v1874_v25, %s1461_s26  ;;  %755 = vrot.lane.b32.xlu1 %v1888_v56, %s1463_s10 }
 0x1af   : > { %721 = vrot.lane.b32.xlu0 %v1868_v53, %s1465_s13  ;;  %719 = vrot.lane.b32.xlu1 %v1888_v56, %s1465_s13 }
 0x1b3   : > { %874 = vperm.xlu0 %1390, %v871_v26   ;;  %743 = vrot.lane.b32.xlu1 %v1888_v56, %s1461_s26 }
 0x1b7   : > { %745 = vrot.lane.b32.xlu1 %v1868_v53, %s1461_s26 }
 0x1f9   : > { %v1925_v8 = vpop.permute.xlu1 %757  ;;  %v806_v0 = vpop.permute.xlu0 %805 }
 0x1fd   : > { %v770_v42 = vpop.permute.xlu0 %769  ;;  %v802_v44 = vpop.permute.xlu1 %801 }
 0x1fe   : > { %v809_v45 = vsel %vm500_vm4, %v806_v0, %v802_v44 }
 0x1ff   : > { %v812_v46 = vmul.f32 %v1739_v24, %v809_v45 }
 0x201   : > { %v869_v31 = vpack.c.bf16 %v812_v46, %v812_v46  ;;  %v794_v1 = vpop.permute.xlu0 %793  ;;  %v766_v22 = vpop.permute.xlu1 %765 }
 0x202   : > { %v773_v51 = vsel %vm425_vm2, %v770_v42, %v766_v22 }
 0x203   : > { %v888_v41 = vsel %vm597_vm7, %v869_v31, 0  ;;  %v776_v43 = vmul.f32 %v773_v51, %v1672_v33 }
 0x204   : > { %1313 = vmatpush3.bf16.msra.mxu1 %v888_v41 }
 0x205   : > { %v782_v5 = vpop.permute.xlu0 %781  ;;  %v778_v50 = vpop.permute.xlu1 %777  ;;  %1314 = vmatprep.subr.bf16.mxu1 %v1462_v3  ;;  %v836_v40 = vrot.slane %v776_v43, 4 }
 0x206   : > { %v785_v48 = vsel %vm450_vm1, %v782_v5, %v778_v50 }
 0x207   : > { %v788_v9 = vmul.f32 %v785_v48, %v1669_v32  ;;  %v857_v31 = vsel %vm589_vm12, %v1868_v53, %v836_v40 }
 0x209   : > { %v1934_v57 = vpop.permute.xlu0 %733  ;;  %v804_v59 = vpop.permute.xlu1 %803 }
 0x20a   : > { %v807_v63 = vsel %vm500_vm4, %v804_v59, %v806_v0  ;;  %v808_v30 = vsel %vm500_vm4, %v802_v44, %v804_v59 }
 0x20b   : > { %v810_v7 = vmul.f32 %v1734_v17, %v808_v30  ;;  %v811_v18 = vmul.f32 %v1699_v47, %v807_v63 }
 0x20d   : > { %v867_v55 = vpack.c.bf16 %v810_v7, %v810_v7  ;;  %v868_v58 = vpack.c.bf16 %v811_v18, %v811_v18  ;;  %v790_v14 = vpop.permute.xlu0 %789  ;;  %v768_v16 = vpop.permute.xlu1 %767 }
 0x20e   : > { %v797_v52 = vsel %vm475_vm3, %v794_v1, %v790_v14  ;;  %v771_v13 = vsel %vm425_vm2, %v768_v16, %v770_v42  ;;  %v772_v2 = vsel %vm425_vm2, %v766_v22, %v768_v16 }
 0x20f   : > { %v800_v11 = vmul.f32 %v797_v52, %v1684_v39  ;;  %1282 = vmatprep.subr.msk.bf16.mxu0 %vm597_vm7, %v868_v58  ;;  %v882_v28 = vsel %vm597_vm7, %v867_v55, 0  ;;  %v774_v26 = vmul.f32 %v772_v2, %v1678_v35  ;;  %v775_v0 = vmul.f32 %v771_v13, %v1641_v20 }
 0x210   : > { %901 = vmatpush1.bf16.msra.mxu0 %v882_v28 }
 0x211   : > { %v845_v54 = vrot.slane %v800_v11, 4  ;;  %v730_v44 = vpop.permute.xlu0 %729  ;;  %v792_v42 = vpop.permute.xlu1 %791  ;;  %v834_v63 = vrot.slane %v774_v26, 4  ;;  %v835_v30 = vrot.slane %v775_v0, 4 }
 0x212   : > { %v795_v45 = vsel %vm475_vm3, %v792_v42, %v794_v1  ;;  %v796_v46 = vsel %vm475_vm3, %v790_v14, %v792_v42  ;;  %v737_v0 = vsel %vm350_vm11, %v1934_v57, %v730_v44 }
 0x213   : > { %v860_v22 = vsel %vm589_vm12, %v788_v9, %v845_v54  ;;  %v798_v41 = vmul.f32 %v796_v46, %v1681_v38  ;;  %v799_v51 = vmul.f32 %v795_v45, %v1649_v23  ;;  %v855_v48 = vsel %vm589_vm12, %v1874_v25, %v834_v63 }
 0x214   : > { %v866_v59 = vpack.c.bf16 %v860_v22, %v857_v31 }
 0x215   : > { %v754_v43 = vpop.permute.xlu0 %753  ;;  %v780_v7 = vpop.permute.xlu1 %779  ;;  %v843_v55 = vrot.slane %v798_v41, 4  ;;  %v844_v58 = vrot.slane %v799_v51, 4 }
 0x216   : > { %v783_v1 = vsel %vm450_vm1, %v780_v7, %v782_v5  ;;  %v784_v18 = vsel %vm450_vm1, %v778_v50, %v780_v7  ;;  %1315 = vmatpush3.bf16.msra.mxu1 %v866_v59  ;;  %v856_v5 = vsel %vm589_vm12, %v1888_v56, %v835_v30  ;;  %v761_v45 = vsel %vm400_vm8, %v1925_v8, %v754_v43 }
 0x217   : > { %v786_v14 = vmul.f32 %v784_v18, %v1675_v34  ;;  %v787_v16 = vmul.f32 %v783_v1, %v1638_v19  ;;  %1316 = vmatprep.subr.bf16.mxu1 %v1462_v3  ;;  %v738_v59 = vmul.f32 %v737_v0, %v1786_v15  ;;  %v762_v63 = vmul.f32 %v761_v45, %v1774_v60 }
 0x219   : > { %v858_v52 = vsel %vm589_vm12, %v786_v14, %v843_v55  ;;  %v718_v13 = vpop.permute.xlu0 %717  ;;  %v732_v2 = vpop.permute.xlu1 %731  ;;  %v859_v50 = vsel %vm589_vm12, %v787_v16, %v844_v58  ;;  %v816_v16 = vrot.slane %v738_v59, 4 }
 0x21a   : > { %v865_v40 = vpack.c.bf16 %v859_v50, %v856_v5  ;;  %v864_v11 = vpack.c.bf16 %v858_v52, %v855_v48  ;;  %v736_v54 = vsel %vm350_vm11, %v730_v44, %v732_v2  ;;  %v735_v31 = vsel %vm350_vm11, %v732_v2, %v1934_v57 }
 0x21b   : > { %v739_v22 = vmul.f32 %v736_v54, %v1765_v36  ;;  %v740_v7 = vmul.f32 %v735_v31, %v1790_v21  ;;  %v825_v50 = vrot.slane %v762_v63, 4 }
 0x21c   : > { %902 = vmatprep.subr.bf16.mxu0 %v865_v40 }
 0x21d   : > { %v742_v28 = vpop.permute.xlu0 %741  ;;  %903 = vmatpush1.bf16.msra.mxu0 %v864_v11  ;;  %v756_v9 = vpop.permute.xlu1 %755  ;;  %v817_v55 = vrot.slane %v739_v22, 4  ;;  %v818_v54 = vrot.slane %v740_v7, 4 }
 0x21e   : > { %v760_v26 = vsel %vm400_vm8, %v754_v43, %v756_v9  ;;  %v759_v44 = vsel %vm400_vm8, %v756_v9, %v1925_v8 }
 0x21f   : > { %v763_v41 = vmul.f32 %v760_v26, %v1744_v29  ;;  %v764_v58 = vmul.f32 %v759_v44, %v1777_v61 }
 0x221   : > { %v720_v42 = vpop.permute.xlu1 %719  ;;  %v722_v51 = vpop.permute.xlu0 %721  ;;  %v826_v8 = vrot.slane %v763_v41, 4  ;;  %v827_v26 = vrot.slane %v764_v58, 4 }
 0x222   : > { %v724_v46 = vsel %vm325_vm13, %v718_v13, %v720_v42  ;;  %v725_v57 = vsel %vm325_vm13, %v722_v51, %v718_v13  ;;  %v723_v1 = vsel %vm325_vm13, %v720_v42, %v722_v51 }
 0x223   : > { %v727_v30 = vmul.f32 %v724_v46, %v1819_v6  ;;  %v726_v48 = vmul.f32 %v725_v57, %v1816_v49  ;;  %v728_v52 = vmul.f32 %v723_v1, %v1827_v27 }
 0x225   : > { %v744_v43 = vpop.permute.xlu1 %743  ;;  %v850_v13 = vsel %vm589_vm12, %v727_v30, %v817_v55  ;;  %v849_v45 = vsel %vm589_vm12, %v726_v48, %v816_v16  ;;  %v851_v46 = vsel %vm589_vm12, %v728_v52, %v818_v54  ;;  %v1086_v48 = vld [vmem:[%s2222_s7] sm:$0xf] }
 0x226   : > { %v748_v18 = vsel %vm375_vm9, %v742_v28, %v744_v43 }
 0x227   : > { %v751_v14 = vmul.f32 %v748_v18, %v1747_v37 }
 0x229   : > { %v746_v2 = vpop.permute.xlu1 %745  ;;  %v853_v5 = vsel %vm589_vm12, %v751_v14, %v826_v8 }
 0x22a   : > { %v747_v40 = vsel %vm375_vm9, %v744_v43, %v746_v2  ;;  %v749_v11 = vsel %vm375_vm9, %v746_v2, %v742_v28  ;;  %v862_v9 = vpack.c.bf16 %v853_v5, %v850_v13  ;;  %v870_v28 = vld [vmem:[%s2219_s4] sm:$0xf] }
 0x22b   : > { %v750_v0 = vmul.f32 %v749_v11, %v1780_v62  ;;  %v752_v42 = vmul.f32 %v747_v40, %v1783_v10 }
 0x22c   : > { %904 = vmatprep.subr.bf16.mxu0 %v862_v9 }
 0x22d   : > { %v852_v31 = vsel %vm589_vm12, %v750_v0, %v825_v50  ;;  %v854_v22 = vsel %vm589_vm12, %v752_v42, %v827_v26 }
 0x22e   : > { %v861_v41 = vpack.c.bf16 %v852_v31, %v849_v45  ;;  %v863_v51 = vpack.c.bf16 %v854_v22, %v851_v46  ;;  %v875_v59 = vpop.permute.xlu0 %874 }
 0x230   : > { %905 = vmatpush1.bf16.msra.mxu0 %v861_v41  ;;  %1317 = vmatpush3.bf16.msra.mxu1 %v863_v51 }
 0x231   : > { %1322 = vmatprep.subr.bf16.mxu1 %v1462_v3 }
 0x233   : > { %1283 = vmatmul.mubr.msk.bf16.vlgmr.msra.gmra.mxu0 %vm877_vm6, %v870_v28  ;;  %1319 = vmatmul.mubr.msk.bf16.vlgmr.msra.gmra.mxu1 %vm877_vm6, %v870_v28 }
 0x234   : > { %1137 = vmatprep.mubr.bf16.mxu0 %v1467_v4  ;;  %1332 = vmatprep.mubr.msk.bf16.mxu1 %vm1466_vm0, %v1462_v3  ;;  %vm1092_vm0 = vcmask 588800  }
 0x2f3   : > { %v924_v44 = vpop.f32.mrf.mxu0  ;;  %v965_v63 = vpop.f32.mrf.mxu1 }
 0x2f4   : > { %v966_v30 = vadd.f32 %v965_v63, %v875_v59  ;;  %v925_v57 = vadd.f32 %v924_v44, %v875_v59 }
 0x2f5   : > { %v926_v43 = vpop.f32.mrf.mxu0  ;;  %v1320_v7 = vpop.f32.mrf.mxu1 }
 0x2f6   : > { %v2032_v1 = vmax.f32 %v966_v30, 0.0  ;;  %v2038_v8 = vmax.f32 %v925_v57, 0.0  ;;  %v927_v14 = vadd.f32 %v926_v43, %v875_v59 }
 0x2f7   : > { %v928_v18 = vpop.f32.mrf.mxu0  ;;  %v968_v55 = vpop.f32.mrf.mxu1 }
 0x2f8   : > { %1014 = vrot.lane.b32.xlu0 %v2032_v1, %s1463_s10  ;;  %1062 = vrot.lane.b32.xlu1 %v2032_v1, %s1460_s25  ;;  %v2048_v16 = vmax.f32 %v927_v14, 0.0 }
 0x2f9   : > { %v929_v4 = vpop.f32.mrf.mxu0  ;;  %v1321_v58 = vpop.f32.mrf.mxu1 }
 0x2fc   : > { %1034 = vrot.lane.b32.xlu0 %v2038_v8, %s1457_s22  ;;  %1038 = vrot.lane.b32.xlu1 %v2032_v1, %s1457_s22 }
 0x300   : > { %1022 = vrot.lane.b32.xlu0 %v2038_v8, %s1458_s23  ;;  %1050 = vrot.lane.b32.xlu1 %v2032_v1, %s1459_s24 }
 0x304   : > { %1060 = vrot.lane.b32.xlu0 %v2048_v16, %s1460_s25  ;;  %1026 = vrot.lane.b32.xlu1 %v2032_v1, %s1458_s23 }
 0x308   : > { %1036 = vrot.lane.b32.xlu0 %v2048_v16, %s1457_s22  ;;  %1002 = vrot.lane.b32.xlu1 %v2032_v1, %s1461_s26 }
 0x30c   : > { %1048 = vrot.lane.b32.xlu0 %v2048_v16, %s1459_s24  ;;  %1058 = vrot.lane.b32.xlu1 %v2038_v8, %s1460_s25 }
 0x310   : > { %1024 = vrot.lane.b32.xlu0 %v2048_v16, %s1458_s23  ;;  %1046 = vrot.lane.b32.xlu1 %v2038_v8, %s1459_s24 }
 0x314   : > { %1000 = vrot.lane.b32.xlu0 %v2048_v16, %s1461_s26  ;;  %998 = vrot.lane.b32.xlu1 %v2038_v8, %s1461_s26  ;;  %s296_s26 = sand.u32 1, %s1447_s28  }
 0x315   : > { %s1199_s21 = scalar_lea.sflag [#allocation3], %s296_s26 }
 0x318   : > { %1012 = vrot.lane.b32.xlu0 %v2048_v16, %s1463_s10  ;;  %1010 = vrot.lane.b32.xlu1 %v2038_v8, %s1463_s10  ;;  %s1336_s10 = smul.u32 12, %s296_s26 }
 0x31c   : > { %976 = vrot.lane.b32.xlu0 %v2048_v16, %s1465_s13  ;;  %974 = vrot.lane.b32.xlu1 %v2038_v8, %s1465_s13 }
 0x320   : > { %988 = vrot.lane.b32.xlu0 %v2048_v16, %s1464_s12  ;;  %986 = vrot.lane.b32.xlu1 %v2038_v8, %s1464_s12 }
 0x324   : > { %990 = vrot.lane.b32.xlu0 %v2032_v1, %s1464_s12  ;;  %978 = vrot.lane.b32.xlu1 %v2032_v1, %s1465_s13  ;;  %s1338_s12 = smul.u32 192, %s1536_s9  ;;  %s298_s13 = scalar_lea.vmem [#allocation2], %s1336_s10 }
 0x325   : > { %s1213_s17 = sshll.u32 %s298_s13, 4  ;;  %s1469_s9 = smov [#allocation2]   ;;  %s1214_s17 = int_to_ptr.vmem [resolvable:$true] %s1213_s17 }
 0x326   : > { %s1211_s20 = scalar_lea.hbm %s2223_s8, %s1338_s12  ;;  %s1395_s22 = scalar_lea.vmem %s1214_s17, 192 }
 0x327   : > { %p1396_p11 = scmp.ne.s32.totalorder %s1214_s17, %s1395_s22  ;;  %s1399_s23 = sshll.u32 %s1469_s9, 4  ;;  %s1400_s23 = int_to_ptr.vmem [resolvable:$false] %s1399_s23 }
 0x328   : > { %1089 = vperm.xlu1 %1391, %v1086_v48   ;;  %s1401_s24 = scalar_lea.vmem %s1400_s23, 384  ;;  %p1402_p0 = scmp.lt.s32.totalorder %s1214_s17, %s1400_s23 }
 0x329   : > { %p1397_p12 = pnand %p1396_p11, %p1553_p5  ;;  %p1403_p1 = scmp.lt.s32.totalorder %s1401_s24, %s1395_s22 }
 0x32b   : > { %p1398_p13 = pneg %p1397_p12  ;;  %p1404_p2 = por %p1403_p1, %p1402_p0 }
 0x32d   : > { %p1405_p3 = pnand %p1404_p2, %p1398_p13 }
 0x36a   : > { %v2089_v52 = vpop.permute.xlu0 %1014  ;;  %v1063_v2 = vpop.permute.xlu1 %1062 }
 0x36e   : > { %v1035_v13 = vpop.permute.xlu0 %1034  ;;  %v1039_v5 = vpop.permute.xlu1 %1038 }
 0x36f   : > { %v1042_v46 = vsel %vm450_vm1, %v1039_v5, %v1035_v13 }
 0x370   : > { %v1045_v7 = vmul.f32 %v1042_v46, %v1669_v32 }
 0x372   : > { %v1023_v50 = vpop.permute.xlu0 %1022  ;;  %v1051_v40 = vpop.permute.xlu1 %1050 }
 0x376   : > { %v1061_v11 = vpop.permute.xlu0 %1060  ;;  %v1027_v9 = vpop.permute.xlu1 %1026 }
 0x377   : > { %v1064_v54 = vsel %vm500_vm4, %v1061_v11, %v1063_v2  ;;  %v1030_v63 = vsel %vm425_vm2, %v1027_v9, %v1023_v50 }
 0x378   : > { %v1068_v26 = vmul.f32 %v1699_v47, %v1064_v54  ;;  %v1033_v32 = vmul.f32 %v1030_v63, %v1672_v33 }
 0x37a   : > { %v1083_v0 = vpack.c.bf16 %v1068_v26, %v1068_v26  ;;  %v1037_v42 = vpop.permute.xlu0 %1036  ;;  %v1003_v45 = vpop.permute.xlu1 %1002 }
 0x37b   : > { %v1040_v41 = vsel %vm450_vm1, %v1037_v42, %v1039_v5  ;;  %v1041_v30 = vsel %vm450_vm1, %v1035_v13, %v1037_v42 }
 0x37c   : > { %1285 = vmatprep.subr.msk.bf16.mxu0 %vm589_vm12, %v1083_v0  ;;  %v1044_v57 = vmul.f32 %v1040_v41, %v1638_v19  ;;  %v1043_v19 = vmul.f32 %v1041_v30, %v1675_v34 }
 0x37e   : > { %v1049_v31 = vpop.permute.xlu0 %1048  ;;  %v1059_v22 = vpop.permute.xlu1 %1058 }
 0x37f   : > { %v1052_v51 = vsel %vm475_vm3, %v1049_v31, %v1051_v40  ;;  %v1065_v28 = vsel %vm500_vm4, %v1059_v22, %v1061_v11  ;;  %v1066_v47 = vsel %vm500_vm4, %v1063_v2, %v1059_v22 }
 0x380   : > { %v1067_v59 = vmul.f32 %v1734_v17, %v1065_v28  ;;  %v1069_v44 = vmul.f32 %v1739_v24, %v1066_v47  ;;  %v1056_v43 = vmul.f32 %v1052_v51, %v1649_v23 }
 0x382   : > { %v1082_v18 = vpack.c.bf16 %v1067_v59, %v1067_v59  ;;  %v1084_v55 = vpack.c.bf16 %v1069_v44, %v1069_v44  ;;  %v1025_v4 = vpop.permute.xlu0 %1024  ;;  %v1047_v58 = vpop.permute.xlu1 %1046  ;;  %v1080_v11 = vpack.c.bf16 %v1056_v43, %v1044_v57 }
 0x383   : > { %v1028_v17 = vsel %vm425_vm2, %v1025_v4, %v1027_v9  ;;  %v1029_v24 = vsel %vm425_vm2, %v1023_v50, %v1025_v4  ;;  %v1053_v14 = vsel %vm475_vm3, %v1047_v58, %v1049_v31  ;;  %v1054_v23 = vsel %vm475_vm3, %v1051_v40, %v1047_v58 }
 0x384   : > { %v1055_v48 = vmul.f32 %v1053_v14, %v1681_v38  ;;  %v1057_v2 = vmul.f32 %v1054_v23, %v1684_v39  ;;  %v1032_v13 = vmul.f32 %v1028_v17, %v1641_v20  ;;  %v1097_v5 = vsel %vm589_vm12, %v1082_v18, 0  ;;  %v1085_v14 = vld [vmem:[%s2221_s6] sm:$0x3] }
 0x385   : > { %v1103_v50 = vsel %vm589_vm12, %v1084_v55, 0  ;;  %v1031_v9 = vmul.f32 %v1029_v24, %v1678_v35  ;;  %1112 = vmatpush1.bf16.msra.mxu0 %v1097_v5  ;;  %v1078_v38 = vpack.c.bf16 %v1033_v32, %v2032_v1 }
 0x386   : > { %v1079_v54 = vpack.c.bf16 %v1055_v48, %v1043_v19  ;;  %v1081_v26 = vpack.c.bf16 %v1057_v2, %v1045_v7  ;;  %1323 = vmatpush3.bf16.msra.mxu1 %v1103_v50  ;;  %v1001_v33 = vpop.permute.xlu0 %1000  ;;  %v999_v40 = vpop.permute.xlu1 %998  ;;  %1113 = vmatprep.subr.bf16.mxu0 %v1080_v11  ;;  %v1077_v39 = vpack.c.bf16 %v1032_v13, %v2048_v16 }
 0x387   : > { %v1004_v34 = vsel %vm375_vm9, %v1001_v33, %v1003_v45  ;;  %v1006_v20 = vsel %vm375_vm9, %v1003_v45, %v999_v40  ;;  %1324 = vmatprep.subr.bf16.mxu1 %v1462_v3  ;;  %v1005_v35 = vsel %vm375_vm9, %v999_v40, %v1001_v33  ;;  %v1076_v0 = vpack.c.bf16 %v1031_v9, %v2038_v8 }
 0x388   : > { %v1009_v42 = vmul.f32 %v1004_v34, %v1783_v10  ;;  %v1007_v46 = vmul.f32 %v1006_v20, %v1780_v62  ;;  %v1008_v62 = vmul.f32 %v1005_v35, %v1747_v37 }
 0x389   : > { %1114 = vmatpush1.bf16.msra.mxu0 %v1079_v54 }
 0x38a   : > { %1325 = vmatpush3.bf16.msra.mxu1 %v1081_v26  ;;  %v1013_v31 = vpop.permute.xlu0 %1012  ;;  %v1011_v22 = vpop.permute.xlu1 %1010  ;;  %1115 = vmatprep.subr.bf16.mxu0 %v1077_v39 }
 0x38b   : > { %v1016_v45 = vsel %vm400_vm8, %v1013_v31, %v2089_v52  ;;  %v1017_v1 = vsel %vm400_vm8, %v1011_v22, %v1013_v31  ;;  %v1018_v8 = vsel %vm400_vm8, %v2089_v52, %v1011_v22  ;;  %1326 = vmatprep.subr.bf16.mxu1 %v1462_v3 }
 0x38c   : > { %v1021_v10 = vmul.f32 %v1016_v45, %v1777_v61  ;;  %v1019_v16 = vmul.f32 %v1018_v8, %v1774_v60  ;;  %v1020_v41 = vmul.f32 %v1017_v1, %v1744_v29 }
 0x38d   : > { %1116 = vmatpush1.bf16.msra.mxu0 %v1076_v0 }
 0x38e   : > { %v1075_v51 = vpack.c.bf16 %v1021_v10, %v1009_v42  ;;  %v1073_v28 = vpack.c.bf16 %v1019_v16, %v1007_v46  ;;  %1327 = vmatpush3.bf16.msra.mxu1 %v1078_v38  ;;  %v977_v47 = vpop.permute.xlu0 %976  ;;  %v975_v59 = vpop.permute.xlu1 %974  ;;  %v1074_v44 = vpack.c.bf16 %v1020_v41, %v1008_v62 }
 0x38f   : > { %1328 = vmatprep.subr.bf16.mxu1 %v1462_v3  ;;  %v981_v52 = vsel %vm325_vm13, %v975_v59, %v977_v47 }
 0x390   : > { %1117 = vmatprep.subr.bf16.mxu0 %v1074_v44  ;;  %v984_v60 = vmul.f32 %v981_v52, %v1819_v6 }
 0x391   : > { %1118 = vmatpush1.bf16.msra.mxu0 %v1073_v28 }
 0x392   : > { %1329 = vmatpush3.bf16.msra.mxu1 %v1075_v51  ;;  %v989_v37 = vpop.permute.xlu0 %988  ;;  %v987_v61 = vpop.permute.xlu1 %986 }
 0x393   : > { %v993_v29 = vsel %vm350_vm11, %v987_v61, %v989_v37  ;;  %1330 = vmatprep.subr.bf16.mxu1 %v1462_v3 }
 0x394   : > { %v996_v63 = vmul.f32 %v993_v29, %v1765_v36 }
 0x396   : > { %v991_v30 = vpop.permute.xlu0 %990  ;;  %v979_v43 = vpop.permute.xlu1 %978  ;;  %v1071_v7 = vpack.c.bf16 %v996_v63, %v984_v60 }
 0x397   : > { %v992_v57 = vsel %vm350_vm11, %v989_v37, %v991_v30  ;;  %v994_v18 = vsel %vm350_vm11, %v991_v30, %v987_v61  ;;  %v980_v55 = vsel %vm325_vm13, %v977_v47, %v979_v43  ;;  %v982_v3 = vsel %vm325_vm13, %v979_v43, %v975_v59 }
 0x398   : > { %v995_v6 = vmul.f32 %v994_v18, %v1786_v15  ;;  %v997_v36 = vmul.f32 %v992_v57, %v1790_v21  ;;  %v983_v4 = vmul.f32 %v982_v3, %v1816_v49  ;;  %v985_v58 = vmul.f32 %v980_v55, %v1827_v27  ;;  %1119 = vmatprep.subr.bf16.mxu0 %v1071_v7 }
 0x39a   : > { %v1070_v17 = vpack.c.bf16 %v995_v6, %v983_v4  ;;  %v1072_v24 = vpack.c.bf16 %v997_v36, %v985_v58 }
 0x39c   : > { %1120 = vmatpush1.bf16.msra.mxu0 %v1070_v17  ;;  %1331 = vmatpush3.bf16.msra.mxu1 %v1072_v24 }
 0x39f   : > { %1286 = vmatmul.mubr.msk.bf16.vlgmr.msra.gmra.mxu0 %vm1092_vm0, %v1085_v14  ;;  %1333 = vmatmul.mubr.msk.bf16.vlgmr.msra.gmra.mxu1 %vm1092_vm0, %v1085_v14 }
 0x3a3   : > { %v1090_v12 = vpop.permute.xlu1 %1089 }
 0x45f   : > { %v1139_v15 = vpop.f32.mrf.mxu0  ;;  %v1180_v21 = vpop.f32.mrf.mxu1 }
 0x460   : > { %v1140_v49 = vadd.f32 %v1139_v15, %v1090_v12  ;;  %v1181_v27 = vadd.f32 %v1180_v21, %v1090_v12 }
 0x461   : > { %v1141_v23 = vpop.f32.mrf.mxu0  ;;  %v1334_v32 = vpop.f32.mrf.mxu1 }
 0x462   : > { %v1186_v19 = vmax.f32 %v1140_v49, 0.0  ;;  %v1188_v48 = vmax.f32 %v1181_v27, 0.0  ;;  %v1142_v2 = vadd.f32 %v1141_v23, %v1090_v12 }
 0x463   : > { %v1143_v13 = vpop.f32.mrf.mxu0  ;;  %v1183_v5 = vpop.f32.mrf.mxu1 }
 0x464   : > { %v1191_v50 = vadd.f32 %v1188_v48, %v1868_v53  ;;  %v1187_v11 = vmax.f32 %v1142_v2, 0.0  ;;  %v1189_v26 = vadd.f32 %v1186_v19, %v1874_v25 }
 0x465   : > { %v1144_v9 = vpop.f32.mrf.mxu0  ;;  %v1335_v54 = vpop.f32.mrf.mxu1 }
 0x466   : > { %1197 = vst [vmem:[%s298_s13 + $0x8] sm:$0xf] %v1191_v50  ;;  %v1190_v33 = vadd.f32 %v1187_v11, %v1888_v56 }
 0x468   : > { %v1194_v40 = vcombine.low %v1189_v26, %v1190_v33 }
 0x46a   : > { %1196 = vst [vmem:[%s298_s13] sm:$0xff] %v1194_v40 }
 0x46b   : > { %1408 = shalt.err (!%p1405_p3)
}
 0x46c   : > { %s1409_s25 = scalar_lea.hbm %s1211_s20, 192  ;;  %s1413_s12 = scalar_lea.hbm %s2223_s8, 384 }
 0x46d   : > { %p1410_p4 = scmp.ne.s32.totalorder %s1211_s20, %s1409_s25  ;;  %p1414_p9 = scmp.lt.s32.totalorder %s1211_s20, %s2223_s8 }
 0x46e   : > { %p1415_p10 = scmp.lt.s32.totalorder %s1413_s12, %s1409_s25 }
 0x46f   : > { %p1411_p7 = pnand %p1410_p4, %p1553_p5 }
 0x470   : > { %p1416_p11 = por %p1415_p10, %p1414_p9 }
 0x471   : > { %p1412_p8 = pneg %p1411_p7 }
 0x473   : > { %p1417_p12 = pnand %p1416_p11, %p1412_p8 }
 0x475   : > { %1420 = shalt.err (!%p1417_p12)
}
 0x476   : > { %1339 = dma.vmem_to_hbm [thread:$0]  (%p1553_p5), %s1214_s17, 192, %s1211_s20, %s1199_s21  }
 0x477 PF: > { %p1345_p13 = scmp.ge.s32.totalorder %s1455_s30, 2  ;;  %s1225_s19 = sand.u32 1, %s1443_s27  }
 0x478   : > { %s1226_s22 = scalar_lea.sflag [#allocation3], %s1225_s19 }
 0x479   : > { %p1342_p0 = pnand %p1345_p13, %p1557_p6 }
 0x47b   : > { %p1343_p1 = pneg %p1342_p0 }
 0x47d   : > { %1438 = dma.done.wait (%p1343_p1), %s1226_s22, 192  }
 0x47e   : > { %1440 = vsyncadd (%p1343_p1), %s1226_s22, 4294967104  ;;  %p18_p2 = scmp.ge.s32.totalorder %s1540_s11, 4   ;;  %s2226_s27 = smov %s1447_s28 }
 0x47f   : > { %s2227_s28 = smov %s1451_s29  ;;  %s2228_s29 = smov %s1551_s14 }
 0x480   : > { %s2229_s30 = smov %s1540_s11  ;;  %20 = sbr.rel (!%p18_p2) target bundleno = 3 (0x3), region = 87 }
 0x485   :  { %1231 = vsyncpa [#allocation3], 1 }
 0x486   :  { %1233 = vsyncpa [#allocation3 + $0x1], 1 }

</bundles_post_ra>
